<compile_context>
chip_gen: v5e
topology: v5e:2x2
jax: 0.10.0
libtpu: 0.0.40
codegen_flags: <defaults>
</compile_context>

<pallas_src>
import functools

import jax
import jax.numpy as jnp
from jax.experimental import pallas as pl
from jax.experimental.pallas import tpu as pltpu


def _round_up(x, m):
    return (x + m - 1) // m * m


def _pick_bt(n_groups, bytes_per_group, target_bytes=1 << 20, min_steps=2):
    """Largest divisor of n_groups whose block stays under target_bytes while
    keeping at least min_steps grid steps (so both v7x TensorCores get work)."""
    best = 1
    for d in range(2, n_groups + 1):
        if n_groups % d:
            continue
        if d * bytes_per_group > target_bytes:
            continue
        if n_groups // d < min_steps:
            continue
        best = d
    return best


def _dsconv_kernel(x_ref, dw_ref, pw_ref, b_ref, o_ref, *,
                   taps, nrows, g_fold, cin, cout, out_len_p, use_mxu):
    """One block of `bt` image-groups per grid step.

    x_ref : (bt, R, Lp)     R = g_fold*P*Cin rows (group-major, phase, channel);
                            Lp = flattened padded per-phase plane (+ guard rows)
    dw_ref: (nrows, K*K)    per-tap depthwise weights (col t = kh*K + kw),
                            rows replicated per folded image group
    pw_ref: (Cout, Cin)     pointwise weights, transposed for (Cout, L) output
    b_ref : (Cout, 1)       pointwise bias with depthwise bias folded in
    o_ref : (bt, g_fold*Cout, out_len_p)   lane-dense output
    """
    dw = dw_ref[...].astype(jnp.float32)                       # (nrows, T)

    # ---- depthwise: sum of constant-lane-shift row slabs * per-row weight ----
    acc = None
    for t, (row0, off) in enumerate(taps):
        xs = x_ref[:, row0:row0 + nrows, off:off + out_len_p].astype(jnp.float32)
        term = xs * dw[:, t:t + 1]                              # (bt, nrows, OLp)
        acc = term if acc is None else acc + term

    # ---- pointwise 1x1 conv, per folded image group --------------------------
    pw = pw_ref[...].astype(jnp.float32)                        # (Cout, Cin)
    b = b_ref[...].astype(jnp.float32)                          # (Cout, 1)
    for g in range(g_fold):
        a_g = acc[:, g * cin:(g + 1) * cin, :]                  # (bt, Cin, OLp)
        if use_mxu:
            # larger channel counts: MXU; bf16 feeds run at full rate on v6e/v7x
            mxu_dt = jnp.bfloat16 if o_ref.dtype == jnp.bfloat16 else jnp.float32
            og = jnp.einsum("oc,bcl->bol",
                            pw.astype(mxu_dt), a_g.astype(mxu_dt),
                            preferred_element_type=jnp.float32)
        else:
            # tiny channel counts: unrolled broadcast-FMAs on the VPU
            og = pw[:, 0:1] * a_g[:, 0:1, :]
            for c in range(1, cin):
                og = og + pw[:, c:c + 1] * a_g[:, c:c + 1, :]
        o_ref[:, g * cout:(g + 1) * cout, :] = (og + b).astype(o_ref.dtype)


def depthwise_separable_conv(x_nchw, dw_w, dw_b, pw_w, pw_b, *,
                             kernel_size, stride, padding):
    """x_nchw: (N, Cin, H, W).  dw_w: (K, K, Cin) (PyTorch (Cin,1,K,K) permuted),
    dw_b: (Cin,), pw_w: (Cin, Cout) (PyTorch (Cout,Cin,1,1) permuted), pw_b: (Cout,).
    Returns (N, Cout, Ho, Wo) matching nn.Conv2d semantics."""
    n, cin, h, w = x_nchw.shape
    cout = pw_w.shape[1]
    k, s, p = kernel_size, stride, padding
    assert h + 2 * p >= k and w + 2 * p >= k, "no valid output positions"

    h_out = (h + 2 * p - k) // s + 1
    w_out = (w + 2 * p - k) // s + 1
    n_phase = s * s
    d = (k - 1) // s                      # max per-phase row/col tap shift
    hq, wq = h_out + d, w_out + d         # per-phase plane ("row stride" = wq)
    out_len = h_out * wq                  # meaningful output lanes (guard cols incl.)
    out_len_p = _round_up(out_len, 128)   # lane-dense store width
    max_shift = d * wq + d                # largest tap lane offset
    # Rows per phase plane, extended so the flat length covers every
    # (tap shift + out_len_p) slice; the extra zero rows double as guard lanes,
    # so no second pad pass is needed.
    hq_ext = max(hq, -(-(max_shift + out_len_p) // wq))
    lp = hq_ext * wq

    # ---- ONE lax.pad: conv padding + crop/extend to the phase-split shape ----
    zero = jnp.zeros((), x_nchw.dtype)
    xp = jax.lax.pad(
        x_nchw, zero,
        ((0, 0, 0), (0, 0, 0),
         (p, s * hq_ext - h - p, 0), (p, s * wq - w - p, 0)))
    # xp: (N, Cin, s*hq_ext, s*wq)

    if s == 1:
        xf = xp.reshape(n, cin, lp)                       # (N, Cin, Lp)
    else:
        # space-to-depth phase split: stride handled here; the kernel only ever
        # does unit lane shifts.
        xq = xp.reshape(n, cin, hq_ext, s, wq, s)
        xq = jnp.transpose(xq, (0, 3, 5, 1, 2, 4))        # (N, s, s, Cin, Hq, Wq)
        xf = xq.reshape(n, n_phase * cin, lp)             # (N, P*Cin, Lp)

    # Fold pairs of images onto the sublane axis when P*Cin under-fills the
    # 8-sublane tile (stride 1, tiny Cin).
    g_fold = 1
    if s == 1:
        while cin * g_fold < 8 and n % (2 * g_fold) == 0 and g_fold < n:
            g_fold *= 2
    rows = g_fold * n_phase * cin
    n_groups = n // g_fold
    xg = xf.reshape(n_groups, rows, lp)

    # static per-tap (first selected row, lane shift); each tap touches the same
    # g_fold*cin rows (= one phase, replicated over folded images)
    nrows = g_fold * cin
    taps = []
    for kh in range(k):
        for kw in range(k):
            ph = (kh % s) * s + (kw % s)
            taps.append((ph * cin, (kh // s) * wq + (kw // s)))

    # compact depthwise weights: one (rows, K*K) tile; col t = tap kh*K + kw
    dw_cols = jnp.transpose(dw_w.reshape(k * k, cin))     # (Cin, K*K)
    dw_cols = jnp.tile(dw_cols, (g_fold, 1))              # (g_fold*Cin, K*K)

    pw_t = jnp.transpose(pw_w)                            # (Cout, Cin)
    # fold depthwise bias into pointwise bias (exact: no BN/ReLU in between)
    b_eff = (pw_b.astype(jnp.float32)
             + dw_b.astype(jnp.float32) @ pw_w.astype(jnp.float32))
    b_eff = b_eff.reshape(cout, 1)

    itemsize = jnp.dtype(x_nchw.dtype).itemsize
    in_bytes = _round_up(rows, 8) * _round_up(lp, 128) * itemsize
    out_bytes = _round_up(g_fold * cout, 8) * out_len_p * itemsize
    bt = _pick_bt(n_groups, in_bytes + out_bytes)
    grid = (n_groups // bt,)
    block_bytes = bt * (in_bytes + out_bytes)
    vmem_limit = int(min(64 * 1024 * 1024, max(32 * 1024 * 1024, 6 * block_bytes)))

    kernel = functools.partial(
        _dsconv_kernel,
        taps=tuple(taps), nrows=nrows, g_fold=g_fold, cin=cin, cout=cout,
        out_len_p=out_len_p, use_mxu=(cin >= 16))

    out_flat = pl.pallas_call(
        kernel,
        out_shape=jax.ShapeDtypeStruct((n_groups, g_fold * cout, out_len_p),
                                       x_nchw.dtype),
        grid_spec=pltpu.PrefetchScalarGridSpec(
            num_scalar_prefetch=0,
            grid=grid,
            in_specs=[
                pl.BlockSpec((bt, rows, lp), lambda i: (i, 0, 0)),
                pl.BlockSpec((nrows, k * k), lambda i: (0, 0)),
                pl.BlockSpec((cout, cin), lambda i: (0, 0)),
                pl.BlockSpec((cout, 1), lambda i: (0, 0)),
            ],
            out_specs=pl.BlockSpec((bt, g_fold * cout, out_len_p),
                                   lambda i: (i, 0, 0)),
        ),
        compiler_params=pltpu.CompilerParams(
            dimension_semantics=("parallel",),
            vmem_limit_bytes=vmem_limit),
    )(xg, dw_cols, pw_t, b_eff)

    # unfold image groups, drop the lane padding and per-row guard columns
    # (one fused slice/reshape pass; output is already NCHW-ordered).
    out = out_flat.reshape(n, cout, out_len_p)[:, :, :out_len]
    out = out.reshape(n, cout, h_out, wq)[:, :, :, :w_out]
    return out


def _reference(x_nchw, dw_w, dw_b, pw_w, pw_b, *, stride, padding):
    """Pure-JAX reference (lax conv) for correctness check."""
    cin = dw_w.shape[-1]
    x = jnp.transpose(x_nchw, (0, 2, 3, 1))
    dw_k = dw_w[:, :, None, :]                       # HWIO, I=1 (depthwise)
    y = jax.lax.conv_general_dilated(
        x, dw_k, (stride, stride),
        [(padding, padding), (padding, padding)],
        dimension_numbers=("NHWC", "HWIO", "NHWC"),
        feature_group_count=cin)
    y = y + dw_b
    z = jax.lax.conv_general_dilated(
        y, pw_w[None, None, :, :], (1, 1), "VALID",
        dimension_numbers=("NHWC", "HWIO", "NHWC"))
    z = z + pw_b
    return jnp.transpose(z, (0, 3, 1, 2))


if __name__ == "__main__":
    in_channels, out_channels = 4, 8

    key = jax.random.PRNGKey(0)
    k_x, k_dw, k_dwb, k_pw, k_pwb = jax.random.split(key, 5)

    x = jax.random.normal(k_x, (2, in_channels, 16, 16), jnp.float32)
    # depthwise weight (PyTorch shape (Cin,1,K,K)) stored as (K,K,Cin)
    dw_w = jax.random.normal(k_dw, (3, 3, in_channels), jnp.float32) * 0.1
    dw_b = jax.random.normal(k_dwb, (in_channels,), jnp.float32) * 0.1
    # pointwise weight (PyTorch shape (Cout,Cin,1,1)) stored as (Cin,Cout)
    pw_w = jax.random.normal(k_pw, (in_channels, out_channels), jnp.float32) * 0.1
    pw_b = jax.random.normal(k_pwb, (out_channels,), jnp.float32) * 0.1

    # primary config: kernel_size=3, stride=1, padding=1 (uses image-pair folding)
    out = depthwise_separable_conv(x, dw_w, dw_b, pw_w, pw_b,
                                   kernel_size=3, stride=1, padding=1)
    out = jax.block_until_ready(out)
    ref = _reference(x, dw_w, dw_b, pw_w, pw_b, stride=1, padding=1)
    assert out.shape == (2, out_channels, 16, 16)
    assert jnp.allclose(out, ref, atol=1e-4, rtol=1e-4), "stride-1 mismatch"

    # stride-2 config exercises the wrapper-side space-to-depth phase split
    out2 = depthwise_separable_conv(x, dw_w, dw_b, pw_w, pw_b,
                                    kernel_size=3, stride=2, padding=1)
    out2 = jax.block_until_ready(out2)
    ref2 = _reference(x, dw_w, dw_b, pw_w, pw_b, stride=2, padding=1)
    assert out2.shape == (2, out_channels, 8, 8)
    assert jnp.allclose(out2, ref2, atol=1e-4, rtol=1e-4), "stride-2 mismatch"

    print("KERNEL_OK")
</pallas_src>

<mosaic_0001>
module attributes {stable_mosaic.version = 11 : i64} {
  func.func @_dsconv_kernel(%arg0: i32, %arg1: memref<1x8x432xf32, #tpu.memory_space<vmem>>, %arg2: memref<8x9xf32, #tpu.memory_space<vmem>>, %arg3: memref<8x4xf32, #tpu.memory_space<vmem>>, %arg4: memref<8x1xf32, #tpu.memory_space<vmem>>, %arg5: memref<1x16x384xf32, #tpu.memory_space<vmem>>) attributes {dimension_semantics = [#tpu.dimension_semantics<parallel>], iteration_bounds = array<i64: 1>, scalar_prefetch = 0 : i64, scratch_operands = 0 : i64, tpu.core_type = #tpu.core_type<tc>, window_params = [{transform_indices = @transform_0, window_bounds = array<i64: 1, 8, 432>}, {pipeline_mode = #tpu.pipeline_mode<synchronous>, transform_indices = @transform_1, window_bounds = array<i64: 8, 9>}, {pipeline_mode = #tpu.pipeline_mode<synchronous>, transform_indices = @transform_2, window_bounds = array<i64: 8, 4>}, {pipeline_mode = #tpu.pipeline_mode<synchronous>, transform_indices = @transform_3, window_bounds = array<i64: 8, 1>}, {transform_indices = @transform_4, window_bounds = array<i64: 1, 16, 384>}]} {
    %c0 = arith.constant 0 : index
    %c0_0 = arith.constant 0 : index
    %0 = vector.load %arg2[%c0, %c0_0] : memref<8x9xf32, #tpu.memory_space<vmem>>, vector<8x9xf32>
    %c0_1 = arith.constant 0 : index
    %c0_2 = arith.constant 0 : index
    %c0_3 = arith.constant 0 : index
    %1 = vector.load %arg1[%c0_1, %c0_2, %c0_3] : memref<1x8x432xf32, #tpu.memory_space<vmem>>, vector<1x8x384xf32>
    %2 = vector.extract_strided_slice %0 {offsets = [0, 0], sizes = [8, 1], strides = [1, 1]} : vector<8x9xf32> to vector<8x1xf32>
    %3 = vector.shape_cast %2 : vector<8x1xf32> to vector<1x8x1xf32>
    %4 = vector.broadcast %3 : vector<1x8x1xf32> to vector<1x8x384xf32>
    %5 = arith.mulf %1, %4 : vector<1x8x384xf32>
    %c0_4 = arith.constant 0 : index
    %c0_5 = arith.constant 0 : index
    %c1 = arith.constant 1 : index
    %6 = vector.load %arg1[%c0_4, %c0_5, %c1] : memref<1x8x432xf32, #tpu.memory_space<vmem>>, vector<1x8x384xf32>
    %7 = vector.extract_strided_slice %0 {offsets = [0, 1], sizes = [8, 1], strides = [1, 1]} : vector<8x9xf32> to vector<8x1xf32>
    %8 = vector.shape_cast %7 : vector<8x1xf32> to vector<1x8x1xf32>
    %9 = vector.broadcast %8 : vector<1x8x1xf32> to vector<1x8x384xf32>
    %10 = arith.mulf %6, %9 : vector<1x8x384xf32>
    %11 = arith.addf %5, %10 : vector<1x8x384xf32>
    %c0_6 = arith.constant 0 : index
    %c0_7 = arith.constant 0 : index
    %c2 = arith.constant 2 : index
    %12 = vector.load %arg1[%c0_6, %c0_7, %c2] : memref<1x8x432xf32, #tpu.memory_space<vmem>>, vector<1x8x384xf32>
    %13 = vector.extract_strided_slice %0 {offsets = [0, 2], sizes = [8, 1], strides = [1, 1]} : vector<8x9xf32> to vector<8x1xf32>
    %14 = vector.shape_cast %13 : vector<8x1xf32> to vector<1x8x1xf32>
    %15 = vector.broadcast %14 : vector<1x8x1xf32> to vector<1x8x384xf32>
    %16 = arith.mulf %12, %15 : vector<1x8x384xf32>
    %17 = arith.addf %11, %16 : vector<1x8x384xf32>
    %c0_8 = arith.constant 0 : index
    %c0_9 = arith.constant 0 : index
    %c18 = arith.constant 18 : index
    %18 = vector.load %arg1[%c0_8, %c0_9, %c18] : memref<1x8x432xf32, #tpu.memory_space<vmem>>, vector<1x8x384xf32>
    %19 = vector.extract_strided_slice %0 {offsets = [0, 3], sizes = [8, 1], strides = [1, 1]} : vector<8x9xf32> to vector<8x1xf32>
    %20 = vector.shape_cast %19 : vector<8x1xf32> to vector<1x8x1xf32>
    %21 = vector.broadcast %20 : vector<1x8x1xf32> to vector<1x8x384xf32>
    %22 = arith.mulf %18, %21 : vector<1x8x384xf32>
    %23 = arith.addf %17, %22 : vector<1x8x384xf32>
    %c0_10 = arith.constant 0 : index
    %c0_11 = arith.constant 0 : index
    %c19 = arith.constant 19 : index
    %24 = vector.load %arg1[%c0_10, %c0_11, %c19] : memref<1x8x432xf32, #tpu.memory_space<vmem>>, vector<1x8x384xf32>
    %25 = vector.extract_strided_slice %0 {offsets = [0, 4], sizes = [8, 1], strides = [1, 1]} : vector<8x9xf32> to vector<8x1xf32>
    %26 = vector.shape_cast %25 : vector<8x1xf32> to vector<1x8x1xf32>
    %27 = vector.broadcast %26 : vector<1x8x1xf32> to vector<1x8x384xf32>
    %28 = arith.mulf %24, %27 : vector<1x8x384xf32>
    %29 = arith.addf %23, %28 : vector<1x8x384xf32>
    %c0_12 = arith.constant 0 : index
    %c0_13 = arith.constant 0 : index
    %c20 = arith.constant 20 : index
    %30 = vector.load %arg1[%c0_12, %c0_13, %c20] : memref<1x8x432xf32, #tpu.memory_space<vmem>>, vector<1x8x384xf32>
    %31 = vector.extract_strided_slice %0 {offsets = [0, 5], sizes = [8, 1], strides = [1, 1]} : vector<8x9xf32> to vector<8x1xf32>
    %32 = vector.shape_cast %31 : vector<8x1xf32> to vector<1x8x1xf32>
    %33 = vector.broadcast %32 : vector<1x8x1xf32> to vector<1x8x384xf32>
    %34 = arith.mulf %30, %33 : vector<1x8x384xf32>
    %35 = arith.addf %29, %34 : vector<1x8x384xf32>
    %c0_14 = arith.constant 0 : index
    %c0_15 = arith.constant 0 : index
    %c36 = arith.constant 36 : index
    %36 = vector.load %arg1[%c0_14, %c0_15, %c36] : memref<1x8x432xf32, #tpu.memory_space<vmem>>, vector<1x8x384xf32>
    %37 = vector.extract_strided_slice %0 {offsets = [0, 6], sizes = [8, 1], strides = [1, 1]} : vector<8x9xf32> to vector<8x1xf32>
    %38 = vector.shape_cast %37 : vector<8x1xf32> to vector<1x8x1xf32>
    %39 = vector.broadcast %38 : vector<1x8x1xf32> to vector<1x8x384xf32>
    %40 = arith.mulf %36, %39 : vector<1x8x384xf32>
    %41 = arith.addf %35, %40 : vector<1x8x384xf32>
    %c0_16 = arith.constant 0 : index
    %c0_17 = arith.constant 0 : index
    %c37 = arith.constant 37 : index
    %42 = vector.load %arg1[%c0_16, %c0_17, %c37] : memref<1x8x432xf32, #tpu.memory_space<vmem>>, vector<1x8x384xf32>
    %43 = vector.extract_strided_slice %0 {offsets = [0, 7], sizes = [8, 1], strides = [1, 1]} : vector<8x9xf32> to vector<8x1xf32>
    %44 = vector.shape_cast %43 : vector<8x1xf32> to vector<1x8x1xf32>
    %45 = vector.broadcast %44 : vector<1x8x1xf32> to vector<1x8x384xf32>
    %46 = arith.mulf %42, %45 : vector<1x8x384xf32>
    %47 = arith.addf %41, %46 : vector<1x8x384xf32>
    %c0_18 = arith.constant 0 : index
    %c0_19 = arith.constant 0 : index
    %c38 = arith.constant 38 : index
    %48 = vector.load %arg1[%c0_18, %c0_19, %c38] : memref<1x8x432xf32, #tpu.memory_space<vmem>>, vector<1x8x384xf32>
    %49 = vector.extract_strided_slice %0 {offsets = [0, 8], sizes = [8, 1], strides = [1, 1]} : vector<8x9xf32> to vector<8x1xf32>
    %50 = vector.shape_cast %49 : vector<8x1xf32> to vector<1x8x1xf32>
    %51 = vector.broadcast %50 : vector<1x8x1xf32> to vector<1x8x384xf32>
    %52 = arith.mulf %48, %51 : vector<1x8x384xf32>
    %53 = arith.addf %47, %52 : vector<1x8x384xf32>
    %c0_20 = arith.constant 0 : index
    %c0_21 = arith.constant 0 : index
    %54 = vector.load %arg3[%c0_20, %c0_21] : memref<8x4xf32, #tpu.memory_space<vmem>>, vector<8x4xf32>
    %c0_22 = arith.constant 0 : index
    %c0_23 = arith.constant 0 : index
    %55 = vector.load %arg4[%c0_22, %c0_23] : memref<8x1xf32, #tpu.memory_space<vmem>>, vector<8x1xf32>
    %56 = vector.extract_strided_slice %53 {offsets = [0, 0, 0], sizes = [1, 4, 384], strides = [1, 1, 1]} : vector<1x8x384xf32> to vector<1x4x384xf32>
    %57 = vector.extract_strided_slice %54 {offsets = [0, 0], sizes = [8, 1], strides = [1, 1]} : vector<8x4xf32> to vector<8x1xf32>
    %58 = vector.extract_strided_slice %56 {offsets = [0, 0, 0], sizes = [1, 1, 384], strides = [1, 1, 1]} : vector<1x4x384xf32> to vector<1x1x384xf32>
    %59 = vector.shape_cast %57 : vector<8x1xf32> to vector<1x8x1xf32>
    %60 = vector.broadcast %59 : vector<1x8x1xf32> to vector<1x8x384xf32>
    %61 = vector.broadcast %58 : vector<1x1x384xf32> to vector<1x8x384xf32>
    %62 = arith.mulf %60, %61 : vector<1x8x384xf32>
    %63 = vector.extract_strided_slice %54 {offsets = [0, 1], sizes = [8, 1], strides = [1, 1]} : vector<8x4xf32> to vector<8x1xf32>
    %64 = vector.extract_strided_slice %56 {offsets = [0, 1, 0], sizes = [1, 1, 384], strides = [1, 1, 1]} : vector<1x4x384xf32> to vector<1x1x384xf32>
    %65 = vector.shape_cast %63 : vector<8x1xf32> to vector<1x8x1xf32>
    %66 = vector.broadcast %65 : vector<1x8x1xf32> to vector<1x8x384xf32>
    %67 = vector.broadcast %64 : vector<1x1x384xf32> to vector<1x8x384xf32>
    %68 = arith.mulf %66, %67 : vector<1x8x384xf32>
    %69 = arith.addf %62, %68 : vector<1x8x384xf32>
    %70 = vector.extract_strided_slice %54 {offsets = [0, 2], sizes = [8, 1], strides = [1, 1]} : vector<8x4xf32> to vector<8x1xf32>
    %71 = vector.extract_strided_slice %56 {offsets = [0, 2, 0], sizes = [1, 1, 384], strides = [1, 1, 1]} : vector<1x4x384xf32> to vector<1x1x384xf32>
    %72 = vector.shape_cast %70 : vector<8x1xf32> to vector<1x8x1xf32>
    %73 = vector.broadcast %72 : vector<1x8x1xf32> to vector<1x8x384xf32>
    %74 = vector.broadcast %71 : vector<1x1x384xf32> to vector<1x8x384xf32>
    %75 = arith.mulf %73, %74 : vector<1x8x384xf32>
    %76 = arith.addf %69, %75 : vector<1x8x384xf32>
    %77 = vector.extract_strided_slice %54 {offsets = [0, 3], sizes = [8, 1], strides = [1, 1]} : vector<8x4xf32> to vector<8x1xf32>
    %78 = vector.extract_strided_slice %56 {offsets = [0, 3, 0], sizes = [1, 1, 384], strides = [1, 1, 1]} : vector<1x4x384xf32> to vector<1x1x384xf32>
    %79 = vector.shape_cast %77 : vector<8x1xf32> to vector<1x8x1xf32>
    %80 = vector.broadcast %79 : vector<1x8x1xf32> to vector<1x8x384xf32>
    %81 = vector.broadcast %78 : vector<1x1x384xf32> to vector<1x8x384xf32>
    %82 = arith.mulf %80, %81 : vector<1x8x384xf32>
    %83 = arith.addf %76, %82 : vector<1x8x384xf32>
    %84 = vector.shape_cast %55 : vector<8x1xf32> to vector<1x8x1xf32>
    %85 = vector.broadcast %84 : vector<1x8x1xf32> to vector<1x8x384xf32>
    %86 = arith.addf %83, %85 : vector<1x8x384xf32>
    %c0_24 = arith.constant 0 : index
    %c0_25 = arith.constant 0 : index
    %c0_26 = arith.constant 0 : index
    %87 = vector.load %arg5[%c0_24, %c0_25, %c0_26] : memref<1x16x384xf32, #tpu.memory_space<vmem>>, vector<1x8x384xf32>
    tpu.vector_store %arg5[%c0_24, %c0_25, %c0_26], %86 {strides = array<i32>} : memref<1x16x384xf32, #tpu.memory_space<vmem>>, vector<1x8x384xf32>,
    %88 = vector.extract_strided_slice %53 {offsets = [0, 4, 0], sizes = [1, 4, 384], strides = [1, 1, 1]} : vector<1x8x384xf32> to vector<1x4x384xf32>
    %89 = vector.extract_strided_slice %54 {offsets = [0, 0], sizes = [8, 1], strides = [1, 1]} : vector<8x4xf32> to vector<8x1xf32>
    %90 = vector.extract_strided_slice %88 {offsets = [0, 0, 0], sizes = [1, 1, 384], strides = [1, 1, 1]} : vector<1x4x384xf32> to vector<1x1x384xf32>
    %91 = vector.shape_cast %89 : vector<8x1xf32> to vector<1x8x1xf32>
    %92 = vector.broadcast %91 : vector<1x8x1xf32> to vector<1x8x384xf32>
    %93 = vector.broadcast %90 : vector<1x1x384xf32> to vector<1x8x384xf32>
    %94 = arith.mulf %92, %93 : vector<1x8x384xf32>
    %95 = vector.extract_strided_slice %54 {offsets = [0, 1], sizes = [8, 1], strides = [1, 1]} : vector<8x4xf32> to vector<8x1xf32>
    %96 = vector.extract_strided_slice %88 {offsets = [0, 1, 0], sizes = [1, 1, 384], strides = [1, 1, 1]} : vector<1x4x384xf32> to vector<1x1x384xf32>
    %97 = vector.shape_cast %95 : vector<8x1xf32> to vector<1x8x1xf32>
    %98 = vector.broadcast %97 : vector<1x8x1xf32> to vector<1x8x384xf32>
    %99 = vector.broadcast %96 : vector<1x1x384xf32> to vector<1x8x384xf32>
    %100 = arith.mulf %98, %99 : vector<1x8x384xf32>
    %101 = arith.addf %94, %100 : vector<1x8x384xf32>
    %102 = vector.extract_strided_slice %54 {offsets = [0, 2], sizes = [8, 1], strides = [1, 1]} : vector<8x4xf32> to vector<8x1xf32>
    %103 = vector.extract_strided_slice %88 {offsets = [0, 2, 0], sizes = [1, 1, 384], strides = [1, 1, 1]} : vector<1x4x384xf32> to vector<1x1x384xf32>
    %104 = vector.shape_cast %102 : vector<8x1xf32> to vector<1x8x1xf32>
    %105 = vector.broadcast %104 : vector<1x8x1xf32> to vector<1x8x384xf32>
    %106 = vector.broadcast %103 : vector<1x1x384xf32> to vector<1x8x384xf32>
    %107 = arith.mulf %105, %106 : vector<1x8x384xf32>
    %108 = arith.addf %101, %107 : vector<1x8x384xf32>
    %109 = vector.extract_strided_slice %54 {offsets = [0, 3], sizes = [8, 1], strides = [1, 1]} : vector<8x4xf32> to vector<8x1xf32>
    %110 = vector.extract_strided_slice %88 {offsets = [0, 3, 0], sizes = [1, 1, 384], strides = [1, 1, 1]} : vector<1x4x384xf32> to vector<1x1x384xf32>
    %111 = vector.shape_cast %109 : vector<8x1xf32> to vector<1x8x1xf32>
    %112 = vector.broadcast %111 : vector<1x8x1xf32> to vector<1x8x384xf32>
    %113 = vector.broadcast %110 : vector<1x1x384xf32> to vector<1x8x384xf32>
    %114 = arith.mulf %112, %113 : vector<1x8x384xf32>
    %115 = arith.addf %108, %114 : vector<1x8x384xf32>
    %116 = vector.shape_cast %55 : vector<8x1xf32> to vector<1x8x1xf32>
    %117 = vector.broadcast %116 : vector<1x8x1xf32> to vector<1x8x384xf32>
    %118 = arith.addf %115, %117 : vector<1x8x384xf32>
    %c0_27 = arith.constant 0 : index
    %c8 = arith.constant 8 : index
    %c0_28 = arith.constant 0 : index
    %119 = vector.load %arg5[%c0_27, %c8, %c0_28] : memref<1x16x384xf32, #tpu.memory_space<vmem>>, vector<1x8x384xf32>
    tpu.vector_store %arg5[%c0_27, %c8, %c0_28], %118 {strides = array<i32>} : memref<1x16x384xf32, #tpu.memory_space<vmem>>, vector<1x8x384xf32>,
    return
  }
  func.func @transform_0(%arg0: i32) -> (i32, i32, i32) {
    %c0_i32 = arith.constant 0 : i32
    %c0_i32_0 = arith.constant 0 : i32
    %c0_i32_1 = arith.constant 0 : i32
    return %arg0, %c0_i32, %c0_i32_0 : i32, i32, i32
  }
  func.func @transform_1(%arg0: i32) -> (i32, i32) {
    %c0_i32 = arith.constant 0 : i32
    %c0_i32_0 = arith.constant 0 : i32
    %c0_i32_1 = arith.constant 0 : i32
    return %c0_i32, %c0_i32_0 : i32, i32
  }
  func.func @transform_2(%arg0: i32) -> (i32, i32) {
    %c0_i32 = arith.constant 0 : i32
    %c0_i32_0 = arith.constant 0 : i32
    %c0_i32_1 = arith.constant 0 : i32
    return %c0_i32, %c0_i32_0 : i32, i32
  }
  func.func @transform_3(%arg0: i32) -> (i32, i32) {
    %c0_i32 = arith.constant 0 : i32
    %c0_i32_0 = arith.constant 0 : i32
    %c0_i32_1 = arith.constant 0 : i32
    return %c0_i32, %c0_i32_0 : i32, i32
  }
  func.func @transform_4(%arg0: i32) -> (i32, i32, i32) {
    %c0_i32 = arith.constant 0 : i32
    %c0_i32_0 = arith.constant 0 : i32
    %c0_i32_1 = arith.constant 0 : i32
    return %arg0, %c0_i32, %c0_i32_0 : i32, i32, i32
  }
}

</mosaic_0001>

<bundles_post_ra>
// kernel: tpu_custom_call.1
= control target key start
LH: loop header
LB: loop body
LE: loop exit
PB: predicated region body
PF: predicated region fallthrough
CT: control target
= control target key end

     0   :  { %9 = vsyncpa [#allocation3], 0  ;;  %s636_s0 = inlined_call_operand.hbm [shape: f32[1,8,432], index: 0, kind: input, shape index: {}]   ;;  %s637_s1 = inlined_call_operand.vmem [shape: f32[8,9], index: 1, kind: input, shape index: {}]   ;;  %s638_s2 = inlined_call_operand.vmem [shape: f32[8,4], index: 2, kind: input, shape index: {}]   ;;  %s639_s3 = inlined_call_operand.vmem [shape: f32[8,1], index: 3, kind: input, shape index: {}]   ;;  %s640_s4 = inlined_call_operand.hbm [shape: f32[1,16,384], index: 4, kind: output, shape index: {}]  }
   0x1   :  { %10 = vsyncpa [#allocation4], 0  ;;  %s16_s17 = sshll.u32 %s636_s0, 4  ;;  %s495_s18 = smov [#allocation2]   ;;  %s17_s17 = int_to_ptr.hbm [resolvable:$true] %s16_s17 }
   0x2   :  { %s18_s19 = sshll.u32 %s495_s18, 4  ;;  %s19_s19 = int_to_ptr.vmem [resolvable:$true] %s18_s19 }
   0x3   :  { %21 = dma.hbm_to_vmem [thread:$0]  %s17_s17, 512, %s19_s19, [#allocation3]  }
   0x4   :  { %491 = dma.done.wait [#allocation3], 512  }
   0x5   :  { %492 = vsyncadd [#allocation3], 4294966784  ;;  %v496_v0 = vmov 2   ;;  %v497_v1 = vmov 1   ;;  %v498_v2 = vmov 7   ;;  %v32_v3 = vld [vmem:[%s637_s1] sm:$0xff] }
   0x6   :  { %431 = vset.pattern.permute.xlu1 %v496_v0  ;;  %430 = vset.pattern.permute.xlu0 %v497_v1  ;;  %v499_v4 = vmov 3   ;;  %v500_v5 = vmov 6   ;;  %v501_v6 = vmov 4   ;;  %v502_v7 = vmov 8   ;;  %v549_v10 = vld [vmem:[#allocation2 + $0x8] sm:$0xff]  ;;  %v551_v11 = vld [vmem:[#allocation2 + $0x10] sm:$0xff] }
   0x7   :  { %437 = vset.pattern.permute.xlu2 %v498_v2  ;;  %79 = vperm.xlu1 %431, %v32_v3   ;;  %v503_v8 = vmov 5   ;;  %v504_v9 = vmov 0   ;;  %v553_v12 = vld [vmem:[#allocation2] sm:$0xff]  ;;  %s505_s0 = smov 126   ;;  %s506_s1 = smov 127   ;;  %v558_v18 = vld [vmem:[#allocation2 + $0x18] sm:$0xff] }
   0x8   :  { %49 = vperm.xlu0 %430, %v32_v3   ;;  %229 = vperm.xlu2 %437, %v32_v3   ;;  %s507_s22 = smov 110   ;;  %s508_s23 = smov 108   ;;  %v288_v46 = vld [vmem:[%s638_s2] sm:$0xff]  ;;  %vm68_vm0 = vcmask 1039360   ;;  %vm98_vm1 = vcmask 1031168   ;;  %vm128_vm2 = vcmask 900096  }
   0x9   :  { %s509_s24 = smov 92   ;;  %s510_s25 = smov 109   ;;  %v289_v62 = vld [vmem:[%s639_s3] sm:$0xff]  ;;  %vm158_vm3 = vcmask 891904   ;;  %vm188_vm4 = vcmask 883712   ;;  %vm218_vm5 = vcmask 752640  }
   0xa   :  { %s511_s26 = smov 91   ;;  %s512_s27 = smov 90   ;;  %vm248_vm6 = vcmask 744448   ;;  %vm278_vm7 = vcmask 736256  }
   0xb   :  { %s513_s3 = smov [#allocation5]   ;;  %s396_s8 = sshll.u32 %s640_s4, 4  ;;  %s397_s8 = int_to_ptr.hbm [resolvable:$true] %s396_s8 }
   0xc   :  { %s394_s5 = sshll.u32 %s513_s3, 4  ;;  %s514_s9 = smov 384   ;;  %s395_s5 = int_to_ptr.vmem [resolvable:$true] %s394_s5 }
   0xd   :  { %s515_s10 = smov 24  }
   0xf   :  { %436 = vset.pattern.permute.xlu1 %v500_v5 }
  0x10   :  { %432 = vset.pattern.permute.xlu0 %v499_v4  ;;  %199 = vperm.xlu1 %436, %v32_v3  }
  0x11   :  { %109 = vperm.xlu0 %432, %v32_v3   ;;  %440 = vset.pattern.permute.xlu2 %v496_v0 }
  0x18   :  { %438 = vset.pattern.permute.xlu1 %v502_v7 }
  0x19   :  { %433 = vset.pattern.permute.xlu0 %v501_v6  ;;  %259 = vperm.xlu1 %438, %v32_v3  }
  0x1a   :  { %139 = vperm.xlu0 %433, %v32_v3  }
  0x21   :  { %439 = vset.pattern.permute.xlu1 %v497_v1 }
  0x22   :  { %434 = vset.pattern.permute.xlu0 %v503_v8 }
  0x23   :  { %169 = vperm.xlu0 %434, %v32_v3  }
  0x2b   :  { %435 = vset.pattern.permute.xlu0 %v504_v9 }
  0x2c   :  { %38 = vperm.xlu0 %435, %v32_v3  }
  0x62   :  { %v230_v36 = vpop.permute.xlu2 %229 }
  0x63   :  { %v234_v39 = vmul.f32 %v230_v36, %v551_v11  ;;  %v232_v47 = vmul.f32 %v230_v36, %v553_v12  ;;  %v235_v50 = vmul.f32 %v230_v36, %v558_v18  ;;  %v233_v52 = vmul.f32 %v230_v36, %v549_v10 }
  0x79   :  { %v80_v13 = vpop.permute.xlu1 %79 }
  0x7a   :  { %v50_v14 = vpop.permute.xlu0 %49  ;;  %v83_v15 = vmul.f32 %v80_v13, %v549_v10  ;;  %v82_v22 = vmul.f32 %v80_v13, %v553_v12  ;;  %v84_v23 = vmul.f32 %v80_v13, %v551_v11  ;;  %v85_v26 = vmul.f32 %v80_v13, %v558_v18 }
  0x7b   :  { %v54_v16 = vmul.f32 %v50_v14, %v551_v11  ;;  %v52_v17 = vmul.f32 %v50_v14, %v553_v12  ;;  %v55_v19 = vmul.f32 %v50_v14, %v558_v18  ;;  %v53_v21 = vmul.f32 %v50_v14, %v549_v10 }
  0x7c   :  { %92 = vrot.lane.b32.xlu0 %v83_v15, %s505_s0 }
  0x7d   :  { %64 = vrot.lane.b32.xlu2 %v54_v16, %s506_s1  ;;  %60 = vrot.lane.b32.xlu1 %v52_v17, %s506_s1 }
  0x82   :  { %v200_v29 = vpop.permute.xlu1 %199 }
  0x83   :  { %v110_v20 = vpop.permute.xlu0 %109  ;;  %v202_v32 = vmul.f32 %v200_v29, %v553_v12  ;;  %v205_v35 = vmul.f32 %v200_v29, %v558_v18  ;;  %v203_v44 = vmul.f32 %v200_v29, %v549_v10  ;;  %v204_v49 = vmul.f32 %v200_v29, %v551_v11 }
  0x84   :  { %v112_v25 = vmul.f32 %v110_v20, %v553_v12  ;;  %v113_v30 = vmul.f32 %v110_v20, %v549_v10  ;;  %v114_v31 = vmul.f32 %v110_v20, %v551_v11  ;;  %v115_v34 = vmul.f32 %v110_v20, %v558_v18 }
  0x85   :  { %66 = vrot.lane.b32.xlu2 %v55_v19, %s506_s1  ;;  %62 = vrot.lane.b32.xlu1 %v53_v21, %s506_s1 }
  0x8b   :  { %v260_v40 = vpop.permute.xlu1 %259 }
  0x8c   :  { %v140_v24 = vpop.permute.xlu0 %139  ;;  %v263_v43 = vmul.f32 %v260_v40, %v549_v10  ;;  %v264_v51 = vmul.f32 %v260_v40, %v551_v11  ;;  %v262_v54 = vmul.f32 %v260_v40, %v553_v12  ;;  %v265_v57 = vmul.f32 %v260_v40, %v558_v18 }
  0x8d   :  { %90 = vrot.lane.b32.xlu2 %v82_v22, %s505_s0  ;;  %94 = vrot.lane.b32.xlu1 %v84_v23, %s505_s0  ;;  %v142_v33 = vmul.f32 %v140_v24, %v553_v12  ;;  %v143_v37 = vmul.f32 %v140_v24, %v549_v10  ;;  %v144_v38 = vmul.f32 %v140_v24, %v551_v11 }
  0x8e   :  { %v145_v42 = vmul.f32 %v140_v24, %v558_v18 }
  0x95   :  { %96 = vrot.lane.b32.xlu2 %v85_v26, %s505_s0  ;;  %v170_v27 = vpop.permute.xlu0 %169  ;;  %120 = vrot.lane.b32.xlu1 %v112_v25, %s507_s22 }
  0x96   :  { %v173_v28 = vmul.f32 %v170_v27, %v549_v10  ;;  %v174_v41 = vmul.f32 %v170_v27, %v551_v11  ;;  %v172_v45 = vmul.f32 %v170_v27, %v553_v12  ;;  %v175_v48 = vmul.f32 %v170_v27, %v558_v18 }
  0x98   :  { %182 = vrot.lane.b32.xlu0 %v173_v28, %s508_s23 }
  0x9d   :  { %122 = vrot.lane.b32.xlu2 %v113_v30, %s507_s22  ;;  %124 = vrot.lane.b32.xlu1 %v114_v31, %s507_s22 }
  0x9e   :  { %v39_v60 = vpop.permute.xlu0 %38 }
  0x9f   :  { %v41_v63 = vmul.f32 %v553_v12, %v39_v60  ;;  %v42_v7 = vmul.f32 %v549_v10, %v39_v60  ;;  %v43_v8 = vmul.f32 %v551_v11, %v39_v60 }
  0xa0   :  { %210 = vrot.lane.b32.xlu0 %v202_v32, %s509_s24 }
  0xa5   :  { %126 = vrot.lane.b32.xlu2 %v115_v34, %s507_s22  ;;  %150 = vrot.lane.b32.xlu1 %v142_v33, %s510_s25 }
  0xa8   :  { %216 = vrot.lane.b32.xlu0 %v205_v35, %s509_s24 }
  0xad   :  { %152 = vrot.lane.b32.xlu2 %v143_v37, %s510_s25  ;;  %154 = vrot.lane.b32.xlu1 %v144_v38, %s510_s25 }
  0xb0   :  { %244 = vrot.lane.b32.xlu0 %v234_v39, %s511_s26 }
  0xb5   :  { %156 = vrot.lane.b32.xlu2 %v145_v42, %s510_s25  ;;  %184 = vrot.lane.b32.xlu1 %v174_v41, %s508_s23 }
  0xb8   :  { %272 = vrot.lane.b32.xlu0 %v263_v43, %s512_s27 }
  0xbd   :  { %180 = vrot.lane.b32.xlu2 %v172_v45, %s508_s23  ;;  %212 = vrot.lane.b32.xlu1 %v203_v44, %s509_s24 }
  0xc0   :  { %292 = vperm.xlu0 %435, %v288_v46  }
  0xc5   :  { %186 = vrot.lane.b32.xlu2 %v175_v48, %s508_s23  ;;  %240 = vrot.lane.b32.xlu1 %v232_v47, %s511_s26 }
  0xcd   :  { %214 = vrot.lane.b32.xlu2 %v204_v49, %s509_s24  ;;  %246 = vrot.lane.b32.xlu1 %v235_v50, %s511_s26 }
  0xd5   :  { %242 = vrot.lane.b32.xlu2 %v233_v52, %s511_s26  ;;  %274 = vrot.lane.b32.xlu1 %v264_v51, %s512_s27 }
  0xd7   :  { %v65_v53 = vpop.permute.xlu2 %64 }
  0xdd   :  { %270 = vrot.lane.b32.xlu2 %v262_v54, %s512_s27  ;;  %302 = vperm.xlu1 %439, %v288_v46  }
  0xdf   :  { %v67_v55 = vpop.permute.xlu2 %66 }
  0xe0   :  { %v71_v56 = vsel %vm68_vm0, %v65_v53, %v67_v55 }
  0xe5   :  { %276 = vrot.lane.b32.xlu2 %v265_v57, %s512_s27  ;;  %441 = vset.pattern.permute.xlu1 %v499_v4 }
  0xe6   :  { %328 = vperm.xlu1 %441, %v288_v46  }
  0xe7   :  { %v91_v58 = vpop.permute.xlu2 %90 }
  0xed   :  { %315 = vperm.xlu2 %440, %v288_v46  }
  0xee   :  { %v93_v1 = vpop.permute.xlu0 %92 }
  0xef   :  { %v97_v59 = vpop.permute.xlu2 %96  ;;  %v61_v61 = vpop.permute.xlu1 %60  ;;  %v99_v6 = vsel %vm98_vm1, %v91_v58, %v93_v1 }
  0xf5   :  { %442 = vset.pattern.permute.xlu2 %v504_v9  ;;  %v77_v9 = vadd.f32 %v71_v56, %v43_v8 }
  0xf6   :  { %342 = vperm.xlu2 %442, %v289_v62  }
  0xf7   :  { %v123_v0 = vpop.permute.xlu2 %122  ;;  %v63_v2 = vpop.permute.xlu1 %62 }
  0xf8   :  { %v69_v3 = vsel %vm68_vm0, %v61_v61, %v63_v2  ;;  %v70_v4 = vsel %vm68_vm0, %v63_v2, %v65_v53 }
  0xf9   :  { %v75_v5 = vadd.f32 %v69_v3, %v41_v63  ;;  %v76_v15 = vadd.f32 %v70_v4, %v42_v7 }
  0xfb   :  { %v105_v13 = vadd.f32 %v99_v6, %v75_v5 }
  0xff   :  { %v127_v14 = vpop.permute.xlu2 %126  ;;  %v95_v12 = vpop.permute.xlu1 %94 }
 0x100   :  { %v100_v16 = vsel %vm98_vm1, %v93_v1, %v95_v12  ;;  %v101_v17 = vsel %vm98_vm1, %v95_v12, %v97_v59 }
 0x101   :  { %v106_v18 = vadd.f32 %v100_v16, %v76_v15  ;;  %v107_v19 = vadd.f32 %v101_v17, %v77_v9 }
 0x107   :  { %v153_v20 = vpop.permute.xlu2 %152  ;;  %v121_v21 = vpop.permute.xlu1 %120 }
 0x108   :  { %v129_v22 = vsel %vm128_vm2, %v121_v21, %v123_v0 }
 0x109   :  { %v135_v23 = vadd.f32 %v129_v22, %v105_v13 }
 0x10a   :  { %v183_v28 = vpop.permute.xlu0 %182 }
 0x10f   :  { %v157_v24 = vpop.permute.xlu2 %156  ;;  %v125_v25 = vpop.permute.xlu1 %124 }
 0x110   :  { %v130_v10 = vsel %vm128_vm2, %v123_v0, %v125_v25  ;;  %v131_v41 = vsel %vm128_vm2, %v125_v25, %v127_v14 }
 0x111   :  { %v136_v11 = vadd.f32 %v130_v10, %v106_v18  ;;  %v137_v48 = vadd.f32 %v131_v41, %v107_v19 }
 0x112   :  { %v211_v31 = vpop.permute.xlu0 %210 }
 0x117   :  { %v181_v26 = vpop.permute.xlu2 %180  ;;  %v151_v27 = vpop.permute.xlu1 %150 }
 0x118   :  { %v159_v37 = vsel %vm158_vm3, %v151_v27, %v153_v20  ;;  %v189_v42 = vsel %vm188_vm4, %v181_v26, %v183_v28 }
 0x119   :  { %v165_v40 = vadd.f32 %v159_v37, %v135_v23 }
 0x11a   :  { %v217_v34 = vpop.permute.xlu0 %216 }
 0x11b   :  { %v195_v44 = vadd.f32 %v189_v42, %v165_v40 }
 0x11f   :  { %v155_v29 = vpop.permute.xlu1 %154  ;;  %v187_v30 = vpop.permute.xlu2 %186 }
 0x120   :  { %v160_v45 = vsel %vm158_vm3, %v153_v20, %v155_v29  ;;  %v161_v46 = vsel %vm158_vm3, %v155_v29, %v157_v24 }
 0x121   :  { %v166_v54 = vadd.f32 %v160_v45, %v136_v11  ;;  %v167_v55 = vadd.f32 %v161_v46, %v137_v48 }
 0x122   :  { %v245_v39 = vpop.permute.xlu0 %244 }
 0x127   :  { %v185_v32 = vpop.permute.xlu1 %184  ;;  %v215_v33 = vpop.permute.xlu2 %214 }
 0x128   :  { %v190_v50 = vsel %vm188_vm4, %v183_v28, %v185_v32  ;;  %v191_v51 = vsel %vm188_vm4, %v185_v32, %v187_v30  ;;  %v221_v63 = vsel %vm218_vm5, %v215_v33, %v217_v34 }
 0x129   :  { %v196_v58 = vadd.f32 %v190_v50, %v166_v54  ;;  %v197_v59 = vadd.f32 %v191_v51, %v167_v55 }
 0x12a   :  { %v273_v60 = vpop.permute.xlu0 %272 }
 0x12b   :  { %v227_v2 = vadd.f32 %v221_v63, %v197_v59 }
 0x12f   :  { %v213_v35 = vpop.permute.xlu1 %212  ;;  %v243_v36 = vpop.permute.xlu2 %242 }
 0x130   :  { %v219_v43 = vsel %vm218_vm5, %v211_v31, %v213_v35  ;;  %v220_v56 = vsel %vm218_vm5, %v213_v35, %v215_v33  ;;  %v250_v3 = vsel %vm248_vm6, %v243_v36, %v245_v39 }
 0x131   :  { %v225_v52 = vadd.f32 %v219_v43, %v195_v44  ;;  %v226_v61 = vadd.f32 %v220_v56, %v196_v58 }
 0x132   :  { %v293_v16 = vpop.permute.xlu0 %292 }
 0x133   :  { %v256_v6 = vadd.f32 %v250_v3, %v226_v61 }
 0x137   :  { %v241_v38 = vpop.permute.xlu1 %240  ;;  %v271_v47 = vpop.permute.xlu2 %270 }
 0x138   :  { %v249_v49 = vsel %vm248_vm6, %v241_v38, %v243_v36  ;;  %v279_v62 = vsel %vm278_vm7, %v271_v47, %v273_v60 }
 0x139   :  { %v255_v57 = vadd.f32 %v249_v49, %v225_v52 }
 0x13b   :  { %v619_v0 = vadd.f32 %v279_v62, %v255_v57 }
 0x13d   :  { %v295_v14 = vperm.slane %v619_v0, 0  ;;  %v351_v9 = vperm.slane %v619_v0, 4  ;;  %v318_v17 = vperm.slane %v619_v0, 2  ;;  %v366_v18 = vperm.slane %v619_v0, 6 }
 0x13e   :  { %v305_v20 = vperm.slane %v619_v0, 1  ;;  %v357_v22 = vperm.slane %v619_v0, 5  ;;  %v331_v45 = vperm.slane %v619_v0, 3  ;;  %v375_v46 = vperm.slane %v619_v0, 7 }
 0x13f   :  { %v247_v53 = vpop.permute.xlu1 %246  ;;  %v277_v4 = vpop.permute.xlu2 %276  ;;  %v298_v19 = vmul.f32 %v295_v14, %v293_v16  ;;  %v354_v21 = vmul.f32 %v351_v9, %v293_v16 }
 0x140   :  { %v251_v1 = vsel %vm248_vm6, %v245_v39, %v247_v53 }
 0x141   :  { %v257_v7 = vadd.f32 %v251_v1, %v227_v2 }
 0x147   :  { %v275_v5 = vpop.permute.xlu1 %274  ;;  %v316_v38 = vpop.permute.xlu2 %315 }
 0x148   :  { %v280_v8 = vsel %vm278_vm7, %v273_v60, %v275_v5  ;;  %v281_v13 = vsel %vm278_vm7, %v275_v5, %v277_v4  ;;  %v321_v51 = vmul.f32 %v318_v17, %v316_v38  ;;  %v369_v54 = vmul.f32 %v366_v18, %v316_v38 }
 0x149   :  { %v286_v15 = vadd.f32 %v280_v8, %v256_v6  ;;  %v287_v12 = vadd.f32 %v281_v13, %v257_v7 }
 0x14b   :  { %v296_v23 = vperm.slane %v286_v15, 0  ;;  %v297_v24 = vperm.slane %v287_v12, 0  ;;  %v306_v25 = vperm.slane %v286_v15, 1  ;;  %v307_v10 = vperm.slane %v287_v12, 1 }
 0x14c   :  { %v319_v11 = vperm.slane %v286_v15, 2  ;;  %v352_v27 = vperm.slane %v286_v15, 4  ;;  %v353_v28 = vperm.slane %v287_v12, 4  ;;  %v358_v29 = vperm.slane %v286_v15, 5 }
 0x14d   :  { %v359_v33 = vperm.slane %v287_v12, 5  ;;  %v320_v34 = vperm.slane %v287_v12, 2  ;;  %v367_v35 = vperm.slane %v286_v15, 6  ;;  %v368_v36 = vperm.slane %v287_v12, 6 }
 0x14e   :  { %v299_v39 = vmul.f32 %v296_v23, %v293_v16  ;;  %v300_v40 = vmul.f32 %v297_v24, %v293_v16  ;;  %v355_v43 = vmul.f32 %v352_v27, %v293_v16  ;;  %v356_v44 = vmul.f32 %v353_v28, %v293_v16 }
 0x14f   :  { %v303_v26 = vpop.permute.xlu1 %302  ;;  %v322_v52 = vmul.f32 %v319_v11, %v316_v38  ;;  %v323_v53 = vmul.f32 %v320_v34, %v316_v38  ;;  %v370_v55 = vmul.f32 %v367_v35, %v316_v38  ;;  %v371_v56 = vmul.f32 %v368_v36, %v316_v38 }
 0x150   :  { %v308_v30 = vmul.f32 %v305_v20, %v303_v26  ;;  %v309_v31 = vmul.f32 %v306_v25, %v303_v26  ;;  %v310_v32 = vmul.f32 %v307_v10, %v303_v26  ;;  %v360_v37 = vmul.f32 %v357_v22, %v303_v26  ;;  %v343_v14 = vpop.permute.xlu2 %342 }
 0x151   :  { %v361_v41 = vmul.f32 %v358_v29, %v303_v26  ;;  %v362_v42 = vmul.f32 %v359_v33, %v303_v26  ;;  %v332_v59 = vperm.slane %v286_v15, 3  ;;  %v333_v60 = vperm.slane %v287_v12, 3 }
 0x152   :  { %v311_v47 = vadd.f32 %v308_v30, %v298_v19  ;;  %v312_v48 = vadd.f32 %v309_v31, %v299_v39  ;;  %v313_v49 = vadd.f32 %v310_v32, %v300_v40  ;;  %v363_v50 = vadd.f32 %v360_v37, %v354_v21 }
 0x153   :  { %v364_v57 = vadd.f32 %v361_v41, %v355_v43  ;;  %v365_v58 = vadd.f32 %v362_v42, %v356_v44  ;;  %v376_v61 = vperm.slane %v286_v15, 7  ;;  %v377_v62 = vperm.slane %v287_v12, 7 }
 0x154   :  { %v324_v1 = vadd.f32 %v321_v51, %v311_v47  ;;  %v325_v2 = vadd.f32 %v322_v52, %v312_v48  ;;  %v326_v0 = vadd.f32 %v323_v53, %v313_v49  ;;  %v372_v3 = vadd.f32 %v369_v54, %v363_v50 }
 0x155   :  { %v373_v9 = vadd.f32 %v370_v55, %v364_v57  ;;  %v374_v16 = vadd.f32 %v371_v56, %v365_v58 }
 0x158   :  { %v329_v63 = vpop.permute.xlu1 %328 }
 0x159   :  { %v334_v4 = vmul.f32 %v331_v45, %v329_v63  ;;  %v335_v5 = vmul.f32 %v332_v59, %v329_v63  ;;  %v336_v6 = vmul.f32 %v333_v60, %v329_v63  ;;  %v378_v7 = vmul.f32 %v375_v46, %v329_v63 }
 0x15a   :  { %v379_v8 = vmul.f32 %v376_v61, %v329_v63  ;;  %v380_v13 = vmul.f32 %v377_v62, %v329_v63 }
 0x15b   :  { %v337_v17 = vadd.f32 %v334_v4, %v324_v1  ;;  %v338_v18 = vadd.f32 %v335_v5, %v325_v2  ;;  %v339_v19 = vadd.f32 %v336_v6, %v326_v0  ;;  %v381_v20 = vadd.f32 %v378_v7, %v372_v3 }
 0x15c   :  { %v382_v15 = vadd.f32 %v379_v8, %v373_v9  ;;  %v383_v12 = vadd.f32 %v380_v13, %v374_v16 }
 0x15d   :  { %v345_v21 = vadd.f32 %v343_v14, %v337_v17  ;;  %v346_v22 = vadd.f32 %v343_v14, %v338_v18  ;;  %v347_v23 = vadd.f32 %v343_v14, %v339_v19  ;;  %v384_v24 = vadd.f32 %v381_v20, %v343_v14 }
 0x15e   :  { %v385_v25 = vadd.f32 %v382_v15, %v343_v14  ;;  %v386_v10 = vadd.f32 %v383_v12, %v343_v14 }
 0x15f   :  { %348 = vst [vmem:[#allocation5] sm:$0xff] %v345_v21 }
 0x160   :  { %349 = vst [vmem:[#allocation5 + $0x8] sm:$0xff] %v346_v22 }
 0x161   :  { %350 = vst [vmem:[#allocation5 + $0x10] sm:$0xff] %v347_v23 }
 0x162   :  { %387 = vst [vmem:[#allocation5 + $0x18] sm:$0xff] %v384_v24 }
 0x163   :  { %388 = vst [vmem:[#allocation5 + $0x20] sm:$0xff] %v385_v25 }
 0x164   :  { %389 = vst [vmem:[#allocation5 + $0x28] sm:$0xff] %v386_v10 }
 0x165   :  { %402 = dma.vmem_to_hbm [thread:$0]  %s395_s5, 768, %s397_s8, [#allocation4], %s514_s9, %s514_s9, %s515_s10  }
 0x166   :  { %493 = dma.done.wait [#allocation4], 768  }
 0x167   :  { %494 = vsyncadd [#allocation4], 4294966528 }
 0x168   :  { %407 = vsyncpa [#allocation3], 1 }
 0x169   :  { %408 = vsyncpa [#allocation4], 1 }

</bundles_post_ra>
